<compile_context>
chip_gen: v6e
topology: v6e:2x2x1
jax: 0.10.0
libtpu: 0.0.40
codegen_flags: <defaults>
</compile_context>

<pallas_src>
import functools

import numpy as np
import jax
import jax.numpy as jnp
from jax.experimental import pallas as pl
from jax.experimental.pallas import tpu as pltpu


def _round_up(x, m):
    return (x + m - 1) // m * m


# forward() concatenation order of EncoderEmbeddings: (feature name, width kind)
# "E" -> categorical feature of width embedding_size, 50 -> dense vector.
_CONCAT_ORDER = [
    ("id", "E"), ("price_bucket", "E"), ("number_of_category_hash", "E"),
    ("category_hash_first_level", "E"), ("category_hash_second_level", "E"),
    ("category_hash_third_level", "E"),
    ("description_vector", 50), ("image_vector", 50),
    ("elapsed_time", "E"), ("event_type", "E"), ("product_action", "E"),
    ("hashed_url", "E"), ("hour", "E"), ("weekday", "E"), ("weekend", "E"),
    ("query_vector", 50),
]
_CAT_INPUT_KEY = {"id": "input_ids"}   # categorical table name -> inputs dict key
_ID_COLS = 16                          # 13 real id columns padded to 16


# ---------------------------------------------------------------------------
# Pallas kernel: fused categorical gather (MXU multi-hot) + dense matmuls
#                + position(+bias) + LayerNorm
# ---------------------------------------------------------------------------
def _embed_ln_kernel(ids_ref, desc_ref, img_ref, qry_ref,
                     sel_ref, tcat_ref, wdesc_ref, wimg_ref, wqry_ref,
                     pos_ref, g_ref, b_ref, o_ref, *, eps):
    # ids_ref  : (k, S, 16)  f32  global (offset) categorical ids, 3 pad columns
    # desc/img/qry_ref : (k, S, 50) f32 dense vectors (unmodified model inputs)
    # sel_ref  : (16, Vp)    bf16 lane->feature selector (0/1)
    # tcat_ref : (Vp, H)     bf16 stacked fused tables  T_f = E_f @ W_f
    # wdesc/wimg/wqry_ref : (50, H) bf16 slices of the linear weight
    # pos_ref  : (S, H)      f32  position embedding + linear bias (folded)
    # g_ref/b_ref : (1, H)   f32  LayerNorm gamma / beta
    # o_ref    : (k, S, H)   f32
    k, s, h_dim = o_ref.shape
    tm = k * s

    def dense_mm(x_ref, w_ref):
        x = x_ref[...].reshape(tm, x_ref.shape[-1]).astype(jnp.bfloat16)
        return jnp.dot(x, w_ref[...], preferred_element_type=jnp.float32)

    # ---- dense 150-d part: three small K=50 bf16 matmuls (f32 accumulation) --
    h = dense_mm(desc_ref, wdesc_ref)
    h = h + dense_mm(img_ref, wimg_ref)
    h = h + dense_mm(qry_ref, wqry_ref)

    # ---- categorical part: multi-hot gather, both matmuls on the idle MXU ----
    # gathered[r, v] = global id of the feature owning lane v (0 for pad lanes);
    # exact because ids <= 255 are bf16-exact and exactly one selector is 1.
    ids = ids_ref[...].reshape(tm, ids_ref.shape[-1]).astype(jnp.bfloat16)
    gathered = jnp.dot(ids, sel_ref[...], preferred_element_type=jnp.float32)
    lane = jax.lax.broadcasted_iota(jnp.int32, gathered.shape, 1).astype(jnp.float32)
    mh = jnp.where(jnp.abs(lane - gathered) < 0.5, 1.0, 0.0).astype(jnp.bfloat16)
    h = h + jnp.dot(mh, tcat_ref[...], preferred_element_type=jnp.float32)

    # ---- + position embedding (+ folded linear bias), broadcast over k seqs --
    h = h.reshape(k, s, h_dim) + pos_ref[...][None]

    # ---- LayerNorm over the true hidden width (no padded lanes) --------------
    mean = jnp.mean(h, axis=-1, keepdims=True)
    cent = h - mean
    var = jnp.mean(cent * cent, axis=-1, keepdims=True)
    inv = jax.lax.rsqrt(var + eps)
    o_ref[...] = (cent * (inv * g_ref[...]) + b_ref[...]).astype(o_ref.dtype)


# ---------------------------------------------------------------------------
# Forward pass: parameter fusion (cheap, O(params)) + pallas_call
# ---------------------------------------------------------------------------
def encoder_embeddings_forward(params, encoder_params, inputs, *,
                               row_tile_target=1024):
    E = encoder_params["embedding_size"]
    H = encoder_params["hidden_size"]
    eps = encoder_params["layer_norm_eps"]
    B, S = inputs["input_ids"].shape

    # ---- feature offsets inside the linear_embed input ----------------------
    w = params["linear_w"]                      # (D_in, H) == torch weight.T
    w_off, off = {}, 0
    for name, kind in _CONCAT_ORDER:
        w_off[name] = off
        off += E if kind == "E" else kind
    assert off == w.shape[0]

    cat_names = [n for n, kind in _CONCAT_ORDER if kind == "E"]
    assert len(cat_names) <= _ID_COLS

    # ---- fused per-feature categorical tables T_f = E_f @ W_f, stacked ------
    tables, v_offsets, v_off = [], {}, 0
    for name in cat_names:
        tbl = params[name]                                    # (vocab_f, E)
        tables.append(tbl @ w[w_off[name]:w_off[name] + E])   # (vocab_f, H)
        v_offsets[name] = v_off
        v_off += tbl.shape[0]
    V = v_off
    assert V <= 256, "fused categorical vocab too large for the multi-hot path"
    V_pad = _round_up(V, 128)
    t_cat = jnp.concatenate(tables, axis=0)
    t_cat = jnp.pad(t_cat, ((0, V_pad - V), (0, 0))).astype(jnp.bfloat16)

    # lane -> feature selector (static 0/1 matrix, pad lanes & pad id cols = 0)
    sel_np = np.zeros((_ID_COLS, V_pad), np.float32)
    for f, name in enumerate(cat_names):
        sel_np[f, v_offsets[name]:v_offsets[name] + params[name].shape[0]] = 1.0
    sel = jnp.asarray(sel_np).astype(jnp.bfloat16)

    # dense-feature weight slices (bf16 MXU operands)
    def wslice(name):
        return w[w_off[name]:w_off[name] + 50].astype(jnp.bfloat16)
    w_desc, w_img, w_qry = wslice("description_vector"), wslice("image_vector"), wslice("query_vector")

    # ---- tiling: k whole sequences per grid step (~row_tile_target rows) -----
    S_pad = _round_up(S, 8)
    k = max(1, min(row_tile_target // S_pad, B))
    if B >= 2 and B // k < 2:          # keep >= 2 grid steps for megacore sharding
        k = max(1, B // 2)
    g = -(-B // k)
    k = -(-B // g)                     # re-balance so batch padding is minimal
    B_pad = g * k

    def pad_bs(x):
        if B_pad == B and S_pad == S:
            return x
        pads = ((0, B_pad - B), (0, S_pad - S)) + ((0, 0),) * (x.ndim - 2)
        return jnp.pad(x, pads)

    # global categorical ids as f32 (values are small integers, exactly stored)
    id_cols = [inputs[_CAT_INPUT_KEY.get(n, n)].astype(jnp.int32) + v_offsets[n]
               for n in cat_names]
    ids = jnp.stack(id_cols, axis=-1)                                   # (B,S,13)
    ids = jnp.pad(ids, ((0, 0), (0, 0), (0, _ID_COLS - len(cat_names))))
    ids = pad_bs(ids).astype(jnp.float32)                               # (B_pad,S_pad,16)

    desc = pad_bs(inputs["description_vector"])                         # (B_pad,S_pad,50)
    img = pad_bs(inputs["image_vector"])
    qry = pad_bs(inputs["query_vector"])
    d_dense = desc.shape[-1]

    # position table + folded linear bias; stays (S_pad, H) — no replication
    pos_bias = params["position"][:S] + params["linear_b"]              # (S, H)
    pos_bias = jnp.pad(pos_bias, ((0, S_pad - S), (0, 0)))
    gamma, beta = params["ln_gamma"], params["ln_beta"]

    row_spec = lambda width: pl.BlockSpec((k, S_pad, width), lambda i: (i, 0, 0))
    const_spec = lambda arr: pl.BlockSpec(arr.shape, lambda i: (0, 0))

    out = pl.pallas_call(
        functools.partial(_embed_ln_kernel, eps=eps),
        out_shape=jax.ShapeDtypeStruct((B_pad, S_pad, H), jnp.float32),
        grid=(g,),
        in_specs=[
            row_spec(_ID_COLS),        # ids
            row_spec(d_dense),         # description_vector
            row_spec(d_dense),         # image_vector
            row_spec(d_dense),         # query_vector
            const_spec(sel),
            const_spec(t_cat),
            const_spec(w_desc),
            const_spec(w_img),
            const_spec(w_qry),
            const_spec(pos_bias),
            const_spec(gamma),
            const_spec(beta),
        ],
        out_specs=pl.BlockSpec((k, S_pad, H), lambda i: (i, 0, 0)),
        compiler_params=pltpu.CompilerParams(
            dimension_semantics=("parallel",)),
    )(ids, desc, img, qry, sel, t_cat, w_desc, w_img, w_qry, pos_bias, gamma, beta)

    if B_pad != B or S_pad != S:
        out = out[:B, :S]
    # TODO(synk): nn.Dropout is identity at inference; training-mode dropout
    # (pltpu.prng_seed / stateful_bernoulli) is not applied here.
    return out


# ---------------------------------------------------------------------------
# Parameter construction (deterministic, synthetic — no checkpoint / w2v load)
# ---------------------------------------------------------------------------
def make_params(key, encoder_params):
    E = encoder_params["embedding_size"]
    H = encoder_params["hidden_size"]
    pad = encoder_params["pad_token_id"]
    D_in = E * 13 + 50 * 3

    names_sizes = [
        ("id", encoder_params["vocab_size"]),
        ("elapsed_time", encoder_params["size_elapsed_time"]),
        ("event_type", encoder_params["size_event_type"]),
        ("product_action", encoder_params["size_product_action"]),
        ("hashed_url", encoder_params["size_hashed_url"]),
        ("price_bucket", encoder_params["size_price_bucket"]),
        ("number_of_category_hash", encoder_params["size_number_of_category_hash"]),
        ("category_hash_first_level", encoder_params["size_category_hash_first_level"]),
        ("category_hash_second_level", encoder_params["size_category_hash_second_level"]),
        ("category_hash_third_level", encoder_params["size_category_hash_third_level"]),
        ("hour", encoder_params["size_hour"]),
        ("weekday", encoder_params["size_weekday"]),
        ("weekend", encoder_params["size_weekend"]),
    ]

    keys = jax.random.split(key, len(names_sizes) + 4)
    params = {}
    for i, (name, vocab) in enumerate(names_sizes):
        tbl = 0.02 * jax.random.normal(keys[i], (vocab, E), dtype=jnp.float32)
        if name != "id":
            # nn.Embedding(padding_idx=pad) zeroes the padding row at init.
            tbl = tbl.at[pad].set(0.0)
        params[name] = tbl

    k_pos, k_w, k_b, _ = keys[len(names_sizes):]
    params["position"] = 0.02 * jax.random.normal(
        k_pos, (encoder_params["window_size"], H), dtype=jnp.float32)
    # linear_embed: torch stores (H, D_in); we keep it transposed (D_in, H).
    params["linear_w"] = (1.0 / jnp.sqrt(D_in)) * jax.random.normal(
        k_w, (D_in, H), dtype=jnp.float32)
    params["linear_b"] = 0.01 * jax.random.normal(k_b, (1, H), dtype=jnp.float32)
    params["ln_gamma"] = jnp.ones((1, H), dtype=jnp.float32)
    params["ln_beta"] = jnp.zeros((1, H), dtype=jnp.float32)
    return params


# ---------------------------------------------------------------------------
if __name__ == "__main__":
    encoder_params = {
        "vocab_size": 12,
        "embedding_size": 16,
        "hidden_size": 32,
        "window_size": 8,           # == sequence length
        "pad_token_id": 0,
        "layer_norm_eps": 1e-12,
        "hidden_dropout_prob": 0.1,
        "size_elapsed_time": 6,
        "size_event_type": 5,
        "size_product_action": 7,
        "size_hashed_url": 11,
        "size_price_bucket": 6,
        "size_number_of_category_hash": 5,
        "size_category_hash_first_level": 9,
        "size_category_hash_second_level": 9,
        "size_category_hash_third_level": 9,
        "size_hour": 24,
        "size_weekday": 7,
        "size_weekend": 2,
    }

    B, S = 2, encoder_params["window_size"]
    H = encoder_params["hidden_size"]
    key = jax.random.PRNGKey(0)
    k_param, k_in = jax.random.split(key)
    params = make_params(k_param, encoder_params)

    def rand_ids(k, vocab):
        return jax.random.randint(k, (B, S), 0, vocab, dtype=jnp.int32)

    ks = jax.random.split(k_in, 16)
    inputs = {
        "input_ids": rand_ids(ks[0], encoder_params["vocab_size"]),
        "elapsed_time": rand_ids(ks[1], encoder_params["size_elapsed_time"]),
        "event_type": rand_ids(ks[2], encoder_params["size_event_type"]),
        "product_action": rand_ids(ks[3], encoder_params["size_product_action"]),
        "hashed_url": rand_ids(ks[4], encoder_params["size_hashed_url"]),
        "price_bucket": rand_ids(ks[5], encoder_params["size_price_bucket"]),
        "number_of_category_hash": rand_ids(ks[6], encoder_params["size_number_of_category_hash"]),
        "category_hash_first_level": rand_ids(ks[7], encoder_params["size_category_hash_first_level"]),
        "category_hash_second_level": rand_ids(ks[8], encoder_params["size_category_hash_second_level"]),
        "category_hash_third_level": rand_ids(ks[9], encoder_params["size_category_hash_third_level"]),
        "hour": rand_ids(ks[10], encoder_params["size_hour"]),
        "weekday": rand_ids(ks[11], encoder_params["size_weekday"]),
        "weekend": rand_ids(ks[12], encoder_params["size_weekend"]),
        "description_vector": jax.random.normal(ks[13], (B, S, 50), dtype=jnp.float32),
        "image_vector": jax.random.normal(ks[14], (B, S, 50), dtype=jnp.float32),
        "query_vector": jax.random.normal(ks[15], (B, S, 50), dtype=jnp.float32),
    }

    out = encoder_embeddings_forward(params, encoder_params, inputs)
    out = jax.block_until_ready(out)
    assert out.shape == (B, S, H)
    assert bool(jnp.all(jnp.isfinite(out)))

    # Independent f32 reference with the ORIGINAL (unfused) module semantics.
    # Tolerance covers the kernel's bf16 MXU operands (~1e-2 after LayerNorm).
    emb = lambda name, ids: jnp.take(params[name], ids, axis=0)
    xr = jnp.concatenate([
        emb("id", inputs["input_ids"]),
        emb("price_bucket", inputs["price_bucket"]),
        emb("number_of_category_hash", inputs["number_of_category_hash"]),
        emb("category_hash_first_level", inputs["category_hash_first_level"]),
        emb("category_hash_second_level", inputs["category_hash_second_level"]),
        emb("category_hash_third_level", inputs["category_hash_third_level"]),
        inputs["description_vector"], inputs["image_vector"],
        emb("elapsed_time", inputs["elapsed_time"]),
        emb("event_type", inputs["event_type"]),
        emb("product_action", inputs["product_action"]),
        emb("hashed_url", inputs["hashed_url"]),
        emb("hour", inputs["hour"]),
        emb("weekday", inputs["weekday"]),
        emb("weekend", inputs["weekend"]),
        inputs["query_vector"],
    ], axis=-1)
    hr = xr @ params["linear_w"] + params["linear_b"][0] + params["position"][:S][None]
    mu = hr.mean(-1, keepdims=True)
    var = ((hr - mu) ** 2).mean(-1, keepdims=True)
    ref = (hr - mu) / jnp.sqrt(var + encoder_params["layer_norm_eps"])
    ref = ref * params["ln_gamma"][0] + params["ln_beta"][0]

    max_err = float(jnp.max(jnp.abs(out - ref)))
    assert jnp.allclose(out, ref, atol=5e-2, rtol=5e-2), f"max_err={max_err}"

    print("KERNEL_OK")
</pallas_src>

<mosaic_0001>
module attributes {stable_mosaic.version = 11 : i64} {
  func.func @_embed_ln_kernel(%arg0: i32, %arg1: memref<1x8x16xf32, #tpu.memory_space<vmem>>, %arg2: memref<1x8x50xf32, #tpu.memory_space<vmem>>, %arg3: memref<1x8x50xf32, #tpu.memory_space<vmem>>, %arg4: memref<1x8x50xf32, #tpu.memory_space<vmem>>, %arg5: memref<16x128xbf16, #tpu.memory_space<vmem>>, %arg6: memref<128x32xbf16, #tpu.memory_space<vmem>>, %arg7: memref<50x32xbf16, #tpu.memory_space<vmem>>, %arg8: memref<50x32xbf16, #tpu.memory_space<vmem>>, %arg9: memref<50x32xbf16, #tpu.memory_space<vmem>>, %arg10: memref<8x32xf32, #tpu.memory_space<vmem>>, %arg11: memref<1x32xf32, #tpu.memory_space<vmem>>, %arg12: memref<1x32xf32, #tpu.memory_space<vmem>>, %arg13: memref<1x8x32xf32, #tpu.memory_space<vmem>>) attributes {dimension_semantics = [#tpu.dimension_semantics<parallel>], iteration_bounds = array<i64: 2>, scalar_prefetch = 0 : i64, scratch_operands = 0 : i64, tpu.core_type = #tpu.core_type<tc>, window_params = [{transform_indices = @transform_0, window_bounds = array<i64: 1, 8, 16>}, {transform_indices = @transform_1, window_bounds = array<i64: 1, 8, 50>}, {transform_indices = @transform_2, window_bounds = array<i64: 1, 8, 50>}, {transform_indices = @transform_3, window_bounds = array<i64: 1, 8, 50>}, {pipeline_mode = #tpu.pipeline_mode<synchronous>, transform_indices = @transform_4, window_bounds = array<i64: 16, 128>}, {pipeline_mode = #tpu.pipeline_mode<synchronous>, transform_indices = @transform_5, window_bounds = array<i64: 128, 32>}, {pipeline_mode = #tpu.pipeline_mode<synchronous>, transform_indices = @transform_6, window_bounds = array<i64: 50, 32>}, {pipeline_mode = #tpu.pipeline_mode<synchronous>, transform_indices = @transform_7, window_bounds = array<i64: 50, 32>}, {pipeline_mode = #tpu.pipeline_mode<synchronous>, transform_indices = @transform_8, window_bounds = array<i64: 50, 32>}, {pipeline_mode = #tpu.pipeline_mode<synchronous>, transform_indices = @transform_9, window_bounds = array<i64: 8, 32>}, {pipeline_mode = #tpu.pipeline_mode<synchronous>, transform_indices = @transform_10, window_bounds = array<i64: 1, 32>}, {pipeline_mode = #tpu.pipeline_mode<synchronous>, transform_indices = @transform_11, window_bounds = array<i64: 1, 32>}, {transform_indices = @transform_12, window_bounds = array<i64: 1, 8, 32>}]} {
    %c0 = arith.constant 0 : index
    %c0_0 = arith.constant 0 : index
    %c0_1 = arith.constant 0 : index
    %0 = vector.load %arg2[%c0, %c0_0, %c0_1] : memref<1x8x50xf32, #tpu.memory_space<vmem>>, vector<1x8x50xf32>
    %1 = vector.shape_cast %0 : vector<1x8x50xf32> to vector<8x50xf32>
    %2 = arith.truncf %1 : vector<8x50xf32> to vector<8x50xbf16>
    %c0_2 = arith.constant 0 : index
    %c0_3 = arith.constant 0 : index
    %3 = vector.load %arg7[%c0_2, %c0_3] : memref<50x32xbf16, #tpu.memory_space<vmem>>, vector<50x32xbf16>
    %cst = arith.constant dense<0.000000e+00> : vector<8x32xf32>
    %4 = tpu.matmul %2, %3, %cst {dimension_numbers = #tpu.dot_dimension_numbers<[1], [0], [0], [1], [0, 0, 1, 1], [], []>} : vector<8x50xbf16>, vector<50x32xbf16>, vector<8x32xf32> -> vector<8x32xf32>
    %c0_4 = arith.constant 0 : index
    %c0_5 = arith.constant 0 : index
    %c0_6 = arith.constant 0 : index
    %5 = vector.load %arg3[%c0_4, %c0_5, %c0_6] : memref<1x8x50xf32, #tpu.memory_space<vmem>>, vector<1x8x50xf32>
    %6 = vector.shape_cast %5 : vector<1x8x50xf32> to vector<8x50xf32>
    %7 = arith.truncf %6 : vector<8x50xf32> to vector<8x50xbf16>
    %c0_7 = arith.constant 0 : index
    %c0_8 = arith.constant 0 : index
    %8 = vector.load %arg8[%c0_7, %c0_8] : memref<50x32xbf16, #tpu.memory_space<vmem>>, vector<50x32xbf16>
    %cst_9 = arith.constant dense<0.000000e+00> : vector<8x32xf32>
    %9 = tpu.matmul %7, %8, %cst_9 {dimension_numbers = #tpu.dot_dimension_numbers<[1], [0], [0], [1], [0, 0, 1, 1], [], []>} : vector<8x50xbf16>, vector<50x32xbf16>, vector<8x32xf32> -> vector<8x32xf32>
    %10 = arith.addf %4, %9 : vector<8x32xf32>
    %c0_10 = arith.constant 0 : index
    %c0_11 = arith.constant 0 : index
    %c0_12 = arith.constant 0 : index
    %11 = vector.load %arg4[%c0_10, %c0_11, %c0_12] : memref<1x8x50xf32, #tpu.memory_space<vmem>>, vector<1x8x50xf32>
    %12 = vector.shape_cast %11 : vector<1x8x50xf32> to vector<8x50xf32>
    %13 = arith.truncf %12 : vector<8x50xf32> to vector<8x50xbf16>
    %c0_13 = arith.constant 0 : index
    %c0_14 = arith.constant 0 : index
    %14 = vector.load %arg9[%c0_13, %c0_14] : memref<50x32xbf16, #tpu.memory_space<vmem>>, vector<50x32xbf16>
    %cst_15 = arith.constant dense<0.000000e+00> : vector<8x32xf32>
    %15 = tpu.matmul %13, %14, %cst_15 {dimension_numbers = #tpu.dot_dimension_numbers<[1], [0], [0], [1], [0, 0, 1, 1], [], []>} : vector<8x50xbf16>, vector<50x32xbf16>, vector<8x32xf32> -> vector<8x32xf32>
    %16 = arith.addf %10, %15 : vector<8x32xf32>
    %c0_16 = arith.constant 0 : index
    %c0_17 = arith.constant 0 : index
    %c0_18 = arith.constant 0 : index
    %17 = vector.load %arg1[%c0_16, %c0_17, %c0_18] : memref<1x8x16xf32, #tpu.memory_space<vmem>>, vector<1x8x16xf32>
    %18 = vector.shape_cast %17 : vector<1x8x16xf32> to vector<8x16xf32>
    %19 = arith.truncf %18 : vector<8x16xf32> to vector<8x16xbf16>
    %c0_19 = arith.constant 0 : index
    %c0_20 = arith.constant 0 : index
    %20 = vector.load %arg5[%c0_19, %c0_20] : memref<16x128xbf16, #tpu.memory_space<vmem>>, vector<16x128xbf16>
    %cst_21 = arith.constant dense<0.000000e+00> : vector<8x128xf32>
    %21 = tpu.matmul %19, %20, %cst_21 {dimension_numbers = #tpu.dot_dimension_numbers<[1], [0], [0], [1], [0, 0, 1, 1], [], []>} : vector<8x16xbf16>, vector<16x128xbf16>, vector<8x128xf32> -> vector<8x128xf32>
    %22 = tpu.iota {dimensions = array<i32: 1>} : vector<8x128xi32>
    %23 = arith.sitofp %22 : vector<8x128xi32> to vector<8x128xf32>
    %24 = arith.subf %23, %21 : vector<8x128xf32>
    %25 = math.absf %24 : vector<8x128xf32>
    %cst_22 = arith.constant 5.000000e-01 : f32
    %26 = vector.broadcast %cst_22 : f32 to vector<8x128xf32>
    %27 = arith.cmpf olt, %25, %26 : vector<8x128xf32>
    %cst_23 = arith.constant 1.000000e+00 : f32
    %cst_24 = arith.constant 0.000000e+00 : f32
    %28 = vector.broadcast %cst_23 : f32 to vector<8x128xf32>
    %29 = vector.broadcast %cst_24 : f32 to vector<8x128xf32>
    %30 = arith.select %27, %28, %29 : vector<8x128xi1>, vector<8x128xf32>
    %31 = arith.truncf %30 : vector<8x128xf32> to vector<8x128xbf16>
    %c0_25 = arith.constant 0 : index
    %c0_26 = arith.constant 0 : index
    %32 = vector.load %arg6[%c0_25, %c0_26] : memref<128x32xbf16, #tpu.memory_space<vmem>>, vector<128x32xbf16>
    %cst_27 = arith.constant dense<0.000000e+00> : vector<8x32xf32>
    %33 = tpu.matmul %31, %32, %cst_27 {dimension_numbers = #tpu.dot_dimension_numbers<[1], [0], [0], [1], [0, 0, 1, 1], [], []>} : vector<8x128xbf16>, vector<128x32xbf16>, vector<8x32xf32> -> vector<8x32xf32>
    %34 = arith.addf %16, %33 : vector<8x32xf32>
    %35 = vector.shape_cast %34 : vector<8x32xf32> to vector<1x8x32xf32>
    %c0_28 = arith.constant 0 : index
    %c0_29 = arith.constant 0 : index
    %36 = vector.load %arg10[%c0_28, %c0_29] : memref<8x32xf32, #tpu.memory_space<vmem>>, vector<8x32xf32>
    %37 = vector.shape_cast %36 : vector<8x32xf32> to vector<1x8x32xf32>
    %38 = arith.addf %35, %37 : vector<1x8x32xf32>
    %cst_30 = arith.constant dense<0.000000e+00> : vector<1x8xf32>
    %39 = vector.multi_reduction <add>, %38, %cst_30 [2] : vector<1x8x32xf32> to vector<1x8xf32>
    %40 = vector.shape_cast %39 : vector<1x8xf32> to vector<1x8x1xf32>
    %cst_31 = arith.constant 3.200000e+01 : f32
    %41 = vector.broadcast %cst_31 : f32 to vector<1x8x1xf32>
    %42 = arith.divf %40, %41 : vector<1x8x1xf32>
    %43 = vector.broadcast %42 : vector<1x8x1xf32> to vector<1x8x32xf32>
    %44 = arith.subf %38, %43 : vector<1x8x32xf32>
    %45 = arith.mulf %44, %44 : vector<1x8x32xf32>
    %cst_32 = arith.constant dense<0.000000e+00> : vector<1x8xf32>
    %46 = vector.multi_reduction <add>, %45, %cst_32 [2] : vector<1x8x32xf32> to vector<1x8xf32>
    %47 = vector.shape_cast %46 : vector<1x8xf32> to vector<1x8x1xf32>
    %cst_33 = arith.constant 3.200000e+01 : f32
    %48 = vector.broadcast %cst_33 : f32 to vector<1x8x1xf32>
    %49 = arith.divf %47, %48 : vector<1x8x1xf32>
    %cst_34 = arith.constant 9.99999996E-13 : f32
    %50 = vector.broadcast %cst_34 : f32 to vector<1x8x1xf32>
    %51 = arith.addf %49, %50 : vector<1x8x1xf32>
    %52 = math.rsqrt %51 : vector<1x8x1xf32>
    %c0_35 = arith.constant 0 : index
    %c0_36 = arith.constant 0 : index
    %53 = vector.load %arg11[%c0_35, %c0_36] : memref<1x32xf32, #tpu.memory_space<vmem>>, vector<1x32xf32>
    %54 = vector.shape_cast %53 : vector<1x32xf32> to vector<1x1x32xf32>
    %55 = vector.broadcast %52 : vector<1x8x1xf32> to vector<1x8x32xf32>
    %56 = vector.broadcast %54 : vector<1x1x32xf32> to vector<1x8x32xf32>
    %57 = arith.mulf %55, %56 : vector<1x8x32xf32>
    %58 = arith.mulf %44, %57 : vector<1x8x32xf32>
    %c0_37 = arith.constant 0 : index
    %c0_38 = arith.constant 0 : index
    %59 = vector.load %arg12[%c0_37, %c0_38] : memref<1x32xf32, #tpu.memory_space<vmem>>, vector<1x32xf32>
    %60 = vector.shape_cast %59 : vector<1x32xf32> to vector<1x1x32xf32>
    %61 = vector.broadcast %60 : vector<1x1x32xf32> to vector<1x8x32xf32>
    %62 = arith.addf %58, %61 : vector<1x8x32xf32>
    %c0_39 = arith.constant 0 : index
    %c0_40 = arith.constant 0 : index
    %c0_41 = arith.constant 0 : index
    %63 = vector.load %arg13[%c0_39, %c0_40, %c0_41] : memref<1x8x32xf32, #tpu.memory_space<vmem>>, vector<1x8x32xf32>
    tpu.vector_store %arg13[%c0_39, %c0_40, %c0_41], %62 {strides = array<i32>} : memref<1x8x32xf32, #tpu.memory_space<vmem>>, vector<1x8x32xf32>,
    return
  }
  func.func @transform_0(%arg0: i32) -> (i32, i32, i32) {
    %c0_i32 = arith.constant 0 : i32
    %c0_i32_0 = arith.constant 0 : i32
    %c0_i32_1 = arith.constant 0 : i32
    return %arg0, %c0_i32, %c0_i32_0 : i32, i32, i32
  }
  func.func @transform_1(%arg0: i32) -> (i32, i32, i32) {
    %c0_i32 = arith.constant 0 : i32
    %c0_i32_0 = arith.constant 0 : i32
    %c0_i32_1 = arith.constant 0 : i32
    return %arg0, %c0_i32, %c0_i32_0 : i32, i32, i32
  }
  func.func @transform_2(%arg0: i32) -> (i32, i32, i32) {
    %c0_i32 = arith.constant 0 : i32
    %c0_i32_0 = arith.constant 0 : i32
    %c0_i32_1 = arith.constant 0 : i32
    return %arg0, %c0_i32, %c0_i32_0 : i32, i32, i32
  }
  func.func @transform_3(%arg0: i32) -> (i32, i32, i32) {
    %c0_i32 = arith.constant 0 : i32
    %c0_i32_0 = arith.constant 0 : i32
    %c0_i32_1 = arith.constant 0 : i32
    return %arg0, %c0_i32, %c0_i32_0 : i32, i32, i32
  }
  func.func @transform_4(%arg0: i32) -> (i32, i32) {
    %c0_i32 = arith.constant 0 : i32
    %c0_i32_0 = arith.constant 0 : i32
    %c0_i32_1 = arith.constant 0 : i32
    return %c0_i32, %c0_i32_0 : i32, i32
  }
  func.func @transform_5(%arg0: i32) -> (i32, i32) {
    %c0_i32 = arith.constant 0 : i32
    %c0_i32_0 = arith.constant 0 : i32
    %c0_i32_1 = arith.constant 0 : i32
    return %c0_i32, %c0_i32_0 : i32, i32
  }
  func.func @transform_6(%arg0: i32) -> (i32, i32) {
    %c0_i32 = arith.constant 0 : i32
    %c0_i32_0 = arith.constant 0 : i32
    %c0_i32_1 = arith.constant 0 : i32
    return %c0_i32, %c0_i32_0 : i32, i32
  }
  func.func @transform_7(%arg0: i32) -> (i32, i32) {
    %c0_i32 = arith.constant 0 : i32
    %c0_i32_0 = arith.constant 0 : i32
    %c0_i32_1 = arith.constant 0 : i32
    return %c0_i32, %c0_i32_0 : i32, i32
  }
  func.func @transform_8(%arg0: i32) -> (i32, i32) {
    %c0_i32 = arith.constant 0 : i32
    %c0_i32_0 = arith.constant 0 : i32
    %c0_i32_1 = arith.constant 0 : i32
    return %c0_i32, %c0_i32_0 : i32, i32
  }
  func.func @transform_9(%arg0: i32) -> (i32, i32) {
    %c0_i32 = arith.constant 0 : i32
    %c0_i32_0 = arith.constant 0 : i32
    %c0_i32_1 = arith.constant 0 : i32
    return %c0_i32, %c0_i32_0 : i32, i32
  }
  func.func @transform_10(%arg0: i32) -> (i32, i32) {
    %c0_i32 = arith.constant 0 : i32
    %c0_i32_0 = arith.constant 0 : i32
    %c0_i32_1 = arith.constant 0 : i32
    return %c0_i32, %c0_i32_0 : i32, i32
  }
  func.func @transform_11(%arg0: i32) -> (i32, i32) {
    %c0_i32 = arith.constant 0 : i32
    %c0_i32_0 = arith.constant 0 : i32
    %c0_i32_1 = arith.constant 0 : i32
    return %c0_i32, %c0_i32_0 : i32, i32
  }
  func.func @transform_12(%arg0: i32) -> (i32, i32, i32) {
    %c0_i32 = arith.constant 0 : i32
    %c0_i32_0 = arith.constant 0 : i32
    %c0_i32_1 = arith.constant 0 : i32
    return %arg0, %c0_i32, %c0_i32_0 : i32, i32, i32
  }
}

</mosaic_0001>

<bundles_post_ra>
// kernel: tpu_custom_call.1
= control target key start
LH: loop header
LB: loop body
LE: loop exit
PB: predicated region body
PF: predicated region fallthrough
CT: control target
= control target key end

     0   :  { %s1542_s0 = inlined_call_operand.vmem [shape: f32[2,8,16], index: 0, kind: input, shape index: {}]   ;;  %s1543_s1 = inlined_call_operand.vmem [shape: f32[2,8,50], index: 1, kind: input, shape index: {}]   ;;  %s1544_s2 = inlined_call_operand.vmem [shape: f32[2,8,50], index: 2, kind: input, shape index: {}]   ;;  %s1545_s3 = inlined_call_operand.vmem [shape: f32[2,8,50], index: 3, kind: input, shape index: {}]   ;;  %s1546_s4 = inlined_call_operand.vmem [shape: bf16[16,128], index: 4, kind: input, shape index: {}]   ;;  %s1547_s5 = inlined_call_operand.vmem [shape: bf16[128,32], index: 5, kind: input, shape index: {}]   ;;  %s1548_s6 = inlined_call_operand.vmem [shape: bf16[50,32], index: 6, kind: input, shape index: {}]   ;;  %s1549_s7 = inlined_call_operand.vmem [shape: bf16[50,32], index: 7, kind: input, shape index: {}]   ;;  %s1550_s8 = inlined_call_operand.vmem [shape: bf16[50,32], index: 8, kind: input, shape index: {}]   ;;  %s1551_s9 = inlined_call_operand.vmem [shape: f32[8,32], index: 9, kind: input, shape index: {}]   ;;  %s1552_s10 = inlined_call_operand.vmem [shape: f32[1,32], index: 10, kind: input, shape index: {}]   ;;  %s1553_s11 = inlined_call_operand.vmem [shape: f32[1,32], index: 11, kind: input, shape index: {}]   ;;  %s1554_s12 = inlined_call_operand.hbm [shape: f32[2,8,32], index: 12, kind: output, shape index: {}]  }
   0x1   :  { %1555 = sst [smem:[#allocation5_spill]] %s1542_s0 }
   0x2   :  { %1556 = sst [smem:[#allocation6_spill]] %s1543_s1 }
   0x3   :  { %1557 = sst [smem:[#allocation7_spill]] %s1544_s2 }
   0x4   :  { %17 = vsyncpa [#allocation3], 0 }
   0x5   :  { %19 = vsyncpa [#allocation3 + $0x1], 0  ;;  %s1328_s21 = smov 0   ;;  %s1330_s22 = smov 0  }
   0x6   :  { %s1332_s23 = smov 0   ;;  %s1334_s24 = smov 0  }
   0x7 LB: > { %s1349_s25 = sadd.s32 4294967295, %s1257_s24   ;;  %s1002_s26 = sadd.s32 4294967294, %s1257_s24   ;;  %s1257_s24 = sphi %s1334_s24, %s1566_s24   ;;  %s1253_s23 = sphi %s1332_s23, %s1565_s23   ;;  %s1249_s22 = sphi %s1330_s22, %s1564_s22   ;;  %s1245_s21 = sphi %s1328_s21, %s1563_s21  }
   0x8   : > { %s1353_s27 = sadd.s32 1, %s1257_s24   ;;  %s304_s28 = sadd.s32 1, %s1253_s23 }
   0x9   : > { %s301_s29 = ssub.s32 %s1257_s24, %s1353_s27  ;;  %p314_p0 = scmp.ne.s32.totalorder %s1253_s23, %s1249_s22 }
   0xa   : > { %p302_p1 = scmp.eq.s32.totalorder %s301_s29, 0  ;;  %p315_p2 = scmp.eq.s32.totalorder %s1349_s25, 1 }
   0xb   : > { %p320_p3 = scmp.ne.s32.totalorder %s1249_s22, %s1245_s21  ;;  %p321_p4 = scmp.eq.s32.totalorder %s1002_s26, 1 }
   0xc   : > { %s1364_s30 = scalar_select %p302_p1, %s1253_s23, %s304_s28  }
   0xd   : > { %p1366_p5 = por %p315_p2, %p314_p0  ;;  %p1370_p6 = por %p321_p4, %p320_p3 }
   0xe   : > { %p1005_p7 = scmp.ge.s32.totalorder %s1257_s24, 1  ;;  %p391_p8 = scmp.lt.s32.totalorder %s1257_s24, 3 }
  0x10   : > { %p392_p9 = pnand %p1005_p7, %p391_p8 }
  0x11   : > { %p444_p10 = scmp.lt.s32.totalorder (!%p392_p9), %s1349_s25, 1  ;;  %s1560_s0 = sld [smem:[#allocation5_spill]] (!%p392_p9) }
  0x12   : > { %395 = sbr.rel (%p392_p9) target bundleno = 747 (0x2eb), region = 68  ;;  %s1561_s2 = sld [smem:[#allocation7_spill]] (!%p392_p9) }
  0x13   : > { %s1562_s1 = sld [smem:[#allocation6_spill]] (!%p392_p9)  ;;  %s441_s18 = sand.u32 (!%p392_p9), 1, %s1249_s22  }
  0x17   : > { %v1174_v0 = vld [vmem:[%s1546_s4] sm:$0xff]   ;;  %v1259_v1 = vmov 0.0   ;;  %vm504_vm0 = vcmask 1040384   ;;  %vm1260_vm1 = vmmov 0   ;;  %s445_s19 = scalar_select %p444_p10, %s1349_s25, 1  ;;  %v1176_v4 = vld [vmem:[%s1549_s7 + $0x10] sm:$0xff]   ;;  %v746_v33 = vlaneseq }
  0x18   : > { %1106 = vmatprep.subr.bf16.mxu1 %v1259_v1  ;;  %1070 = vmatprep.subr.bf16.mxu0 %v1259_v1  ;;  %v1175_v2 = vld [vmem:[%s1549_s7 + $0x18] ss:$0 sps:$4 sm:$0x11]   ;;  %vm702_vm2 = vcmask 130048   ;;  %v1177_v7 = vld [vmem:[%s1549_s7 + $0x8] sm:$0xff]   ;;  %v1178_v8 = vld [vmem:[%s1549_s7] sm:$0xff]  }
  0x19   : > { %1107 = vmatpush3.bf16.msra.mxu1 %v1174_v0  ;;  %1108 = vmatprep.mubr.msk.bf16.mxu1 %vm1260_vm1, %v1259_v1  ;;  %v506_v3 = vsel %vm504_vm0, %v1175_v2, 0  ;;  %s1392_s20 = sshll.u32 %s445_s19, 3  ;;  %v1179_v9 = vld [vmem:[%s1548_s6 + $0x18] ss:$0 sps:$4 sm:$0x11]   ;;  %vm500_vm3 = vcmask 408576  }
  0x1a   : > { %1078 = vmatprep.mubr.msk.bf16.mxu0 %vm1260_vm1, %v1259_v1  ;;  %1112 = vmatprep.subr.bf16.mxu1 %v1259_v1  ;;  %s447_s16 = scalar_lea.vmem %s1560_s0, %s1392_s20  ;;  %s455_s28 = scalar_lea.vmem %s1561_s2, %s1392_s20  ;;  %v1187_v11 = vld [vmem:[%s1547_s5 + $0x38] sm:$0xff]   ;;  %v573_v13 = vsel %vm504_vm0, %v1179_v9, 0  ;;  %v1188_v14 = vld [vmem:[%s1547_s5 + $0x30] sm:$0xff]   ;;  %v1189_v16 = vld [vmem:[%s1547_s5 + $0x28] sm:$0xff]   ;;  %v747_v34 = vand.u32 127, %v746_v33  ;;  %vm861_vm6 = vcmask 261120  }
  0x1b   : > { %1071 = vmatpush3.bf16.msra.mxu0 %v506_v3  ;;  %v692_v5 = vld [vmem:[%s447_s16] sm:$0xff]  ;;  %v1180_v15 = vld [vmem:[%s1548_s6 + $0x10] sm:$0xff]   ;;  %v1181_v17 = vld [vmem:[%s1548_s6 + $0x8] sm:$0xff]   ;;  %s451_s19 = scalar_lea.vmem %s1562_s1, %s1392_s20  ;;  %s459_s0 = scalar_lea.vmem %s1545_s3, %s1392_s20  ;;  %v1261_v42 = vmov 1.0|1.0  }
  0x1c   : > { %1072 = vmatprep.subr.bf16.mxu0 %v1259_v1  ;;  %v693_v6 = vpack.c.bf16 %v692_v5, %v692_v5  ;;  %v470_v10 = vld [vmem:[%s455_s28] sm:$0xff]  ;;  %v1183_v21 = vld [vmem:[%s1550_s8 + $0x18] ss:$0 sps:$4 sm:$0x11]   ;;  %v1192_v25 = vld [vmem:[%s1547_s5 + $0x10] sm:$0xff]   ;;  %v748_v35 = vcvt.s32.f32 %v747_v34  ;;  %s1041_s20 = sshll.u32 %s1349_s25, 7 }
  0x1d   : > { %v471_v12 = vpack.c.bf16 %v470_v10, %v470_v10  ;;  %v1190_v18 = vld [vmem:[%s1547_s5 + $0x20] sm:$0xff]   ;;  %v1191_v22 = vld [vmem:[%s1547_s5 + $0x18] sm:$0xff]   ;;  %v649_v24 = vsel %vm504_vm0, %v1183_v21, 0  ;;  %v1184_v26 = vld [vmem:[%s1550_s8 + $0x10] sm:$0xff]   ;;  %s905_s2 = scalar_lea.hbm %s1554_s12, %s1041_s20  ;;  %s1262_s28 = smov [#allocation2]  }
  0x1e   : > { %1109 = vmatmul.mubr.msk.bf16.vlgmr.msra.gmra.mxu1 %vm702_vm2, %v693_v6  ;;  %v1182_v19 = vld [vmem:[%s1548_s6] sm:$0xff]   ;;  %v1185_v27 = vld [vmem:[%s1550_s8 + $0x8] sm:$0xff]   ;;  %s1201_s29 = sshll.u32 %s1262_s28, 4  ;;  %s1202_s29 = int_to_ptr.vmem [resolvable:$false] %s1201_s29 }
  0x1f   : > { %1073 = vmatpush3.bf16.msra.mxu0 %v1176_v4  ;;  %1128 = vmatprep.mubr.msk.bf16.mxu1 %vm1260_vm1, %v1259_v1  ;;  %v461_v20 = vld [vmem:[%s451_s19] sm:$0xff]  ;;  %v1193_v31 = vld [vmem:[%s1547_s5 + $0x8] sm:$0xff]   ;;  %s894_s19 = scalar_lea.sflag [#allocation3], %s441_s18  ;;  %s1203_s25 = scalar_lea.vmem %s1202_s29, 256 }
  0x20   : > { %1074 = vmatprep.subr.bf16.mxu0 %v1259_v1  ;;  %1113 = vmatpush3.bf16.msra.mxu1 %v1187_v11  ;;  %v462_v23 = vpack.c.bf16 %v461_v20, %v461_v20  ;;  %v1186_v28 = vld [vmem:[%s1550_s8] sm:$0xff]  }
  0x21   : > { %1114 = vmatprep.subr.bf16.mxu1 %v1259_v1  ;;  %v615_v29 = vld [vmem:[%s459_s0] sm:$0xff]  ;;  %s1006_s0 = sshll.u32 %s441_s18, 3 }
  0x22   : > { %v616_v30 = vpack.c.bf16 %v615_v29, %v615_v29  ;;  %v1194_v32 = vld [vmem:[%s1547_s5] sm:$0xff]   ;;  %s443_s15 = scalar_lea.vmem [#allocation2], %s1006_s0 }
  0x23   : > { %1075 = vmatpush3.bf16.msra.mxu0 %v1177_v7  ;;  %v859_v58 = vld [vmem:[%s1551_s9] sm:$0xff]  ;;  %s907_s16 = sshll.u32 %s443_s15, 4  ;;  %s908_s16 = int_to_ptr.vmem [resolvable:$true] %s907_s16 }
  0x24   : > { %1076 = vmatprep.subr.bf16.mxu0 %v1259_v1  ;;  %1115 = vmatpush3.bf16.msra.mxu1 %v1188_v14  ;;  %v1038_v9 = vld [vmem:[%s1552_s10] ss:$0 sm:$0xff]  ;;  %s1197_s26 = scalar_lea.vmem %s908_s16, 128  ;;  %p1204_p0 = scmp.lt.s32.totalorder %s908_s16, %s1202_s29 }
  0x25   : > { %1116 = vmatprep.subr.bf16.mxu1 %v1259_v1  ;;  %p1198_p11 = scmp.ne.s32.totalorder %s908_s16, %s1197_s26  ;;  %p1205_p1 = scmp.lt.s32.totalorder %s1203_s25, %s1197_s26 }
  0x27   : > { %1077 = vmatpush3.bf16.msra.mxu0 %v1178_v8  ;;  %p1199_p12 = pnand %p1198_p11, %p1366_p5  ;;  %p1206_p2 = por %p1205_p1, %p1204_p0 }
  0x28   : > { %1082 = vmatprep.subr.bf16.mxu0 %v1259_v1  ;;  %1117 = vmatpush3.bf16.msra.mxu1 %v1189_v16 }
  0x29   : > { %1118 = vmatprep.subr.bf16.mxu1 %v1259_v1  ;;  %p1200_p13 = pneg %p1199_p12 }
  0x2a   : > { %1079 = vmatmul.mubr.msk.bf16.vlgmr.msra.gmra.mxu0 %vm500_vm3, %v471_v12  ;;  %v1039_v12 = vld [vmem:[%s1553_s11] ss:$0 sm:$0xff] }
  0x2b   : > { %1083 = vmatpush3.bf16.msra.mxu0 %v573_v13  ;;  %1090 = vmatprep.mubr.msk.bf16.mxu0 %vm1260_vm1, %v1259_v1  ;;  %p1207_p3 = pnand %p1206_p2, %p1200_p13 }
  0x2c   : > { %1084 = vmatprep.subr.bf16.mxu0 %v1259_v1  ;;  %1119 = vmatpush3.bf16.msra.mxu1 %v1190_v18 }
  0x2d   : > { %1120 = vmatprep.subr.bf16.mxu1 %v1259_v1 }
  0x2f   : > { %1085 = vmatpush3.bf16.msra.mxu0 %v1180_v15 }
  0x30   : > { %1086 = vmatprep.subr.bf16.mxu0 %v1259_v1  ;;  %1121 = vmatpush3.bf16.msra.mxu1 %v1191_v22 }
  0x31   : > { %1122 = vmatprep.subr.bf16.mxu1 %v1259_v1 }
  0x33   : > { %1087 = vmatpush3.bf16.msra.mxu0 %v1181_v17 }
  0x34   : > { %1088 = vmatprep.subr.bf16.mxu0 %v1259_v1  ;;  %1123 = vmatpush3.bf16.msra.mxu1 %v1192_v25 }
  0x35   : > { %1124 = vmatprep.subr.bf16.mxu1 %v1259_v1 }
  0x37   : > { %1089 = vmatpush3.bf16.msra.mxu0 %v1182_v19 }
  0x38   : > { %1094 = vmatprep.subr.bf16.mxu0 %v1259_v1  ;;  %1125 = vmatpush3.bf16.msra.mxu1 %v1193_v31 }
  0x39   : > { %1126 = vmatprep.subr.bf16.mxu1 %v1259_v1 }
  0x3a   : > { %1091 = vmatmul.mubr.msk.bf16.vlgmr.msra.gmra.mxu0 %vm500_vm3, %v462_v23 }
  0x3b   : > { %1095 = vmatpush3.bf16.msra.mxu0 %v649_v24  ;;  %1102 = vmatprep.mubr.msk.bf16.mxu0 %vm1260_vm1, %v1259_v1 }
  0x3c   : > { %1096 = vmatprep.subr.bf16.mxu0 %v1259_v1  ;;  %1127 = vmatpush3.bf16.msra.mxu1 %v1194_v32 }
  0x3f   : > { %1097 = vmatpush3.bf16.msra.mxu0 %v1184_v26 }
  0x40   : > { %1098 = vmatprep.subr.bf16.mxu0 %v1259_v1 }
  0x43   : > { %1099 = vmatpush3.bf16.msra.mxu0 %v1185_v27 }
  0x44   : > { %1100 = vmatprep.subr.bf16.mxu0 %v1259_v1 }
  0x47   : > { %1101 = vmatpush3.bf16.msra.mxu0 %v1186_v28 }
  0x4a   : > { %1103 = vmatmul.mubr.msk.bf16.vlgmr.msra.gmra.mxu0 %vm500_vm3, %v616_v30 }
  0xde   : > { %v740_v36 = vpop.f32.mrf.mxu1 }
  0xdf   : > { %v749_v37 = vsub.f32 %v748_v35, %v740_v36 }
  0xe0   : > { %v1110_v38 = vpop.f32.mrf.mxu1 }
  0xe1   : > { %v750_v39 = vand.u32 2147483647, %v749_v37 }
  0xe2   : > { %v743_v40 = vpop.f32.mrf.mxu1 }
  0xe3   : > { %vm751_vm4 = vcmp.lt.f32.partialorder %v750_v39, 0.5 }
  0xe4   : > { %vm1036_vm5 = vmpackc.low %vm751_vm4, %vm751_vm4  ;;  %v1111_v41 = vpop.f32.mrf.mxu1 }
  0xe5   : > { %1129 = vmatmul.mubr.msk.bf16.vlgmr.msra.gmra.mxu1 %vm1036_vm5, %v1261_v42 }
  0xea   : > { %v542_v43 = vpop.f32.mrf.mxu0 }
  0xec   : > { %v1080_v44 = vpop.f32.mrf.mxu0 }
  0xee   : > { %v545_v45 = vpop.f32.mrf.mxu0 }
  0xf0   : > { %v1081_v46 = vpop.f32.mrf.mxu0 }
  0xfa   : > { %v609_v47 = vpop.f32.mrf.mxu0 }
  0xfb   : > { %v610_v48 = vadd.f32 %v609_v47, %v542_v43 }
  0xfc   : > { %v1092_v49 = vpop.f32.mrf.mxu0 }
  0xfe   : > { %v612_v50 = vpop.f32.mrf.mxu0 }
 0x100   : > { %v1093_v51 = vpop.f32.mrf.mxu0 }
 0x10a   : > { %v685_v52 = vpop.f32.mrf.mxu0 }
 0x10b   : > { %v691_v53 = vadd.f32 %v685_v52, %v610_v48 }
 0x10c   : > { %v1104_v54 = vpop.f32.mrf.mxu0 }
 0x10e   : > { %v688_v55 = vpop.f32.mrf.mxu0 }
 0x110   : > { %v1105_v56 = vpop.f32.mrf.mxu0 }
 0x1a5   : > { %v852_v57 = vpop.f32.mrf.mxu1 }
 0x1a6   : > { %v858_v59 = vadd.f32 %v852_v57, %v691_v53 }
 0x1a7   : > { %v1130_v60 = vpop.f32.mrf.mxu1 }
 0x1a8   : > { %v860_v61 = vadd.f32 %v859_v58, %v858_v59 }
 0x1a9   : > { %v855_v62 = vpop.f32.mrf.mxu1 }
 0x1aa   : > { %v862_v63 = vsel %vm861_vm6, %v860_v61, 0.0 }
 0x1ab   : > { %863 = vadd.xlane.f32.xlu0 %v862_v63  ;;  %v1131_v0 = vpop.f32.mrf.mxu1 }
 0x234   : > { %v864_v1 = vpop.xlane.xlu0 %863 }
 0x235   : > { %v866_v2 = vmul.f32 0.03125, %v864_v1 }
 0x237   : > { %v867_v3 = vsub.f32 %v860_v61, %v866_v2 }
 0x239   : > { %v868_v4 = vmul.f32 %v867_v3, %v867_v3 }
 0x23b   : > { %v869_v5 = vsel %vm861_vm6, %v868_v4, 0.0 }
 0x23c   : > { %870 = vadd.xlane.f32.xlu0 %v869_v5 }
 0x2c5   : > { %v871_v6 = vpop.xlane.xlu0 %870 }
 0x2c6   : > { %v872_v7 = vmul.f32 0.03125, %v871_v6 }
 0x2c8   : > { %v873_v8 = vadd.f32 1e-12, %v872_v7 }
 0x2ca   : > { %1195 = vrsqrt.f32 %v873_v8 }
 0x2d7   : > { %v1196_v10 = vpop.eup %1195 }
 0x2d8   : > { %v882_v11 = vmul.f32 %v1196_v10, %v1038_v9 }
 0x2da   : > { %v883_v13 = vmul.f32 %v882_v11, %v867_v3 }
 0x2dc   : > { %v891_v14 = vadd.f32 %v1039_v12, %v883_v13 }
 0x2de   : > { %892 = vst.msk [vmem:[%s443_s15] sm:$0xff] %vm861_vm6, %v891_v14 }
 0x2df   : > { %1210 = shalt.err (!%p1207_p3)
}
 0x2e0   : > { %s1211_s1 = scalar_lea.hbm %s905_s2, 128  ;;  %s1215_s20 = scalar_lea.hbm %s1554_s12, 256 }
 0x2e1   : > { %p1212_p4 = scmp.ne.s32.totalorder %s905_s2, %s1211_s1  ;;  %p1216_p9 = scmp.lt.s32.totalorder %s905_s2, %s1554_s12 }
 0x2e2   : > { %p1217_p10 = scmp.lt.s32.totalorder %s1215_s20, %s1211_s1 }
 0x2e3   : > { %p1213_p7 = pnand %p1212_p4, %p1366_p5 }
 0x2e4   : > { %p1218_p11 = por %p1217_p10, %p1216_p9 }
 0x2e5   : > { %p1214_p8 = pneg %p1213_p7 }
 0x2e7   : > { %p1219_p12 = pnand %p1218_p11, %p1214_p8 }
 0x2e9   : > { %1222 = shalt.err (!%p1219_p12)
}
 0x2ea   : > { %1132 = dma.vmem_to_hbm [thread:$0]  (%p1366_p5), %s908_s16, 128, %s905_s2, %s894_s19  }
 0x2eb PF: > { %p1138_p13 = scmp.ge.s32.totalorder %s1257_s24, 2  ;;  %s919_s26 = sand.u32 1, %s1245_s21  }
 0x2ec   : > { %s920_s28 = scalar_lea.sflag [#allocation3], %s919_s26 }
 0x2ed   : > { %p1135_p0 = pnand %p1138_p13, %p1370_p6 }
 0x2ef   : > { %p1136_p1 = pneg %p1135_p0 }
 0x2f1   : > { %1240 = dma.done.wait (%p1136_p1), %s920_s28, 128  }
 0x2f2   : > { %1242 = vsyncadd (%p1136_p1), %s920_s28, 4294967168  ;;  %p22_p2 = scmp.ge.s32.totalorder %s1353_s27, 4   ;;  %s1563_s21 = smov %s1249_s22 }
 0x2f3   : > { %s1564_s22 = smov %s1253_s23  ;;  %s1565_s23 = smov %s1364_s30 }
 0x2f4   : > { %s1566_s24 = smov %s1353_s27  ;;  %24 = sbr.rel (!%p22_p2) target bundleno = 7 (0x7), region = 112 }
 0x2f9   :  { %925 = vsyncpa [#allocation3], 1 }
 0x2fa   :  { %927 = vsyncpa [#allocation3 + $0x1], 1 }

</bundles_post_ra>
